<compile_context>
chip_gen: v7x
topology: tpu7x:2x2x1
jax: 0.10.0
libtpu: 0.0.40
codegen_flags: <defaults>
</compile_context>

<pallas_src>
import functools

import jax
import jax.numpy as jnp
from jax.experimental import pallas as pl
from jax.experimental.pallas import tpu as pltpu


def autopad(k, p=None, d=1):
    """Same-shape padding (mirrors the PyTorch helper for scalar k)."""
    if d > 1:
        k = d * (k - 1) + 1
    if p is None:
        p = k // 2
    return p


def _round_up(x, m):
    return ((x + m - 1) // m) * m


def _pick_row_tile(h_out, w_pad, m_target=2048):
    """Output-row tile th: prefer a divisor of h_out with th*w_pad in
    [256, m_target]; otherwise pad h_out to a multiple of th (never th=1 falls
    out silently for prime h_out)."""
    max_th = max(1, m_target // w_pad)
    best = 1
    for t in range(1, min(h_out, max_th) + 1):
        if h_out % t == 0:
            best = t
    if best * w_pad >= 256 or best == h_out:
        return best, h_out
    th = min(h_out, max_th)
    return th, _round_up(h_out, th)


# ----------------------------------------------------------------------------
# Shared epilogue: bias add (f32) -> bf16 SiLU -> bf16 store.
# (BN scale is pre-folded into the weights in the wrapper.)
# ----------------------------------------------------------------------------
def _bn_silu_store(acc, bias_ref, o_ref, *, th, w_out, w_out_pad, act):
    y = acc + bias_ref[...]                       # (M, tn) f32 + (1, tn) f32
    y = y.astype(jnp.bfloat16)                    # bf16 epilogue (EUP/VPU relief)
    if act:
        y = y * jax.nn.sigmoid(y)                 # SiLU in bf16
    y = y.reshape(th, w_out_pad, y.shape[-1])
    if w_out_pad != w_out:
        y = y[:, :w_out, :]                       # drop W alignment padding
    o_ref[0] = y                                  # bf16, lane-dense (tn % 128 == 0)


# ----------------------------------------------------------------------------
# 1x1 / im2col path: a plain tiled matmul, fully auto-pipelined by BlockSpec.
#   x_ref:    (1, th, w_out_pad, cin_p) bf16
#   w_ref:    (1, cin_p, tn)            bf16   (BN scale folded in)
#   bias_ref: (1, tn)                   f32
#   o_ref:    (1, th, w_out, tn)        bf16
# ----------------------------------------------------------------------------
def _conv1x1_kernel(x_ref, w_ref, bias_ref, o_ref, *, th, w_out, w_out_pad, act):
    cin_p = x_ref.shape[-1]
    lhs = x_ref[0].reshape(th * w_out_pad, cin_p)          # free reshape (w_out_pad % 8 == 0)
    acc = jnp.dot(lhs, w_ref[0], preferred_element_type=jnp.float32)
    _bn_silu_store(acc, bias_ref, o_ref, th=th, w_out=w_out,
                   w_out_pad=w_out_pad, act=act)


# ----------------------------------------------------------------------------
# General KxK path: manual double-buffered row-strip DMA (halo rows included).
#   x_hbm:    (B, h_in, w_in, cin_p) bf16 in HBM (memory_space=pl.ANY)
#   w_ref:    (k*k, cin_p, tn)       bf16
#   bias_ref: (1, tn)                f32
#   o_ref:    (1, th, w_out, tn)     bf16
#   xbuf:     VMEM (2, strip_rows, w_in, cin_p)           -- DMA double buffer
#   xw_ref:   VMEM (k, strip_rows*w_out_pad, cin_p)       -- staged shifted copies
#   sem:      DMA semaphores (2,)
# ----------------------------------------------------------------------------
def _convkxk_kernel(x_hbm, w_ref, bias_ref, o_ref, xbuf, xw_ref, sem,
                    *, k, d, th, w_out, w_out_pad, strip_rows, act):
    b = pl.program_id(0)
    r = pl.program_id(1)
    n = pl.program_id(2)
    n_row_blocks = pl.num_programs(1)
    cin_p = xbuf.shape[-1]
    m = th * w_out_pad
    slot = r % 2

    def strip_copy(row_block, buf_slot):
        return pltpu.make_async_copy(
            x_hbm.at[b, pl.ds(row_block * th, strip_rows)],
            xbuf.at[buf_slot],
            sem.at[buf_slot])

    # Fetch / stage the strip only on the first Cout tile of each (b, r); it is
    # reused for every Cout tile of that row block.
    @pl.when(n == 0)
    def _():
        @pl.when(r == 0)
        def _():
            strip_copy(0, 0).start()              # per-batch prologue
        strip_copy(r, slot).wait()

        @pl.when(r + 1 < n_row_blocks)
        def _():
            strip_copy(r + 1, 1 - slot).start()   # prefetch the next row strip

        # Stage the k column-shifted, width-compacted copies once per strip
        # (k relayouts instead of k*k, amortized over all Cout tiles); the
        # per-tap slices below are then aligned row slices (no relayout).
        strip_ref = xbuf.at[slot]                 # ref view, no copy
        for dj in range(k):
            shifted = strip_ref[:, dj * d:dj * d + w_out_pad, :]
            xw_ref[dj] = shifted.reshape(strip_rows * w_out_pad, cin_p)

    acc = None
    for di in range(k):
        off = di * d * w_out_pad                  # multiple of 8 (w_out_pad % 8 == 0)
        for dj in range(k):
            lhs = xw_ref[dj, off:off + m, :]      # aligned, tile-friendly slice
            t = jnp.dot(lhs, w_ref[di * k + dj],
                        preferred_element_type=jnp.float32)
            acc = t if acc is None else acc + t
    _bn_silu_store(acc, bias_ref, o_ref, th=th, w_out=w_out,
                   w_out_pad=w_out_pad, act=act)


# ----------------------------------------------------------------------------
# Wrapper.
# ----------------------------------------------------------------------------
def conv_bn_silu(x, weight, gamma, beta, mean, var, *,
                 k=1, s=1, p=None, g=1, d=1, eps=1e-5, act=True,
                 out_layout="NCHW",
                 im2col_max_k=256,
                 w_resident_max_bytes=4 << 20,
                 row_tile_target=2048):
    """Fused Conv2d(bias=False) + BatchNorm2d(eval) + SiLU.

    x: (B, Cin, H, W) float32 (module layout).  Returns NCHW float32 by default;
    out_layout='NHWC' returns the bf16 NHWC kernel output directly (skips the
    relayout / upcast when the surrounding model allows it)."""
    assert s == 1, "stride > 1 not implemented in the Pallas path"   # TODO(synk)
    assert g == 1, "grouped conv not implemented in the Pallas path"  # TODO(synk)
    p = autopad(k, p, d)

    B, cin, H, W = x.shape
    cout = weight.shape[0]
    h_out = H + 2 * p - d * (k - 1)
    w_out = W + 2 * p - d * (k - 1)

    # Fold BN (eval) scale into the conv weights; only the bias survives to the
    # kernel epilogue.
    scale = (gamma / jnp.sqrt(var + eps)).astype(jnp.float32)
    bias = (beta - mean * scale).astype(jnp.float32)
    w_sc = weight.astype(jnp.float32) * scale[:, None, None, None]

    # bf16 before the NCHW->NHWC relayout (halves relayout HBM traffic).
    x_nhwc = jnp.transpose(x.astype(jnp.bfloat16), (0, 2, 3, 1))

    # Tiny-Cin layers (stem): im2col over the k*k taps -> dense contraction of
    # k*k*Cin (padded to 128/256) instead of k*k matmuls over a padded Cin.
    use_im2col = k > 1 and k * k * cin <= im2col_max_k
    if use_im2col:
        xp = jnp.pad(x_nhwc, ((0, 0), (p, p), (p, p), (0, 0)))
        taps = [xp[:, di * d:di * d + h_out, dj * d:dj * d + w_out, :]
                for di in range(k) for dj in range(k)]
        x_eff = jnp.concatenate(taps, axis=-1)            # (B, h_out, w_out, k*k*cin)
        w_eff = jnp.transpose(w_sc, (2, 3, 1, 0)).reshape(1, k * k * cin, cout)
        k_eff, p_eff, cin_eff = 1, 0, k * k * cin
    else:
        x_eff = x_nhwc
        w_eff = jnp.transpose(w_sc, (2, 3, 1, 0)).reshape(k * k, cin, cout)
        k_eff, p_eff, cin_eff = k, p, cin

    cin_p = _round_up(cin_eff, 128)
    w_out_pad = _round_up(w_out, 8)          # 8-aligned M dim, free reshapes

    # Cout tiling: keep the whole weight resident when small (its index map is
    # then grid-invariant -> fetched once); tile to 256 otherwise (matches the
    # 256-wide MXU on v6e/v7x and bounds VMEM).
    cout_p = _round_up(cout, 128)
    full_w_bytes = k_eff * k_eff * cin_p * cout_p * 2
    if cout_p > 256 and full_w_bytes > w_resident_max_bytes:
        tn = 256
        cout_p = _round_up(cout_p, tn)
    else:
        tn = cout_p
    n_ct = cout_p // tn

    th, h_out_pad = _pick_row_tile(h_out, w_out_pad, row_tile_target)
    n_rt = h_out_pad // th

    halo = (k_eff - 1) * d
    strip_rows = th + halo
    h_in = h_out_pad + halo
    w_in = w_out_pad + halo

    # Spatial (halo + alignment) and channel zero padding, all in bf16.
    x_pad = jnp.pad(
        x_eff,
        ((0, 0),
         (p_eff, h_in - x_eff.shape[1] - p_eff),
         (p_eff, w_in - x_eff.shape[2] - p_eff),
         (0, cin_p - cin_eff)))
    w_pad = jnp.pad(w_eff, ((0, 0), (0, cin_p - cin_eff), (0, cout_p - cout))
                    ).astype(jnp.bfloat16)
    bias_pad = jnp.pad(bias, (0, cout_p - cout)).reshape(1, cout_p)

    grid = (B, n_rt, n_ct)
    w_spec = pl.BlockSpec((k_eff * k_eff, cin_p, tn), lambda b, r, n: (0, 0, n))
    b_spec = pl.BlockSpec((1, tn), lambda b, r, n: (0, n))
    out_spec = pl.BlockSpec((1, th, w_out, tn), lambda b, r, n: (b, r, 0, n))

    if k_eff == 1:
        in_specs = [pl.BlockSpec((1, th, w_out_pad, cin_p),
                                 lambda b, r, n: (b, r, 0, 0)),
                    w_spec, b_spec]
        scratch = ()
        kern = functools.partial(_conv1x1_kernel, th=th, w_out=w_out,
                                 w_out_pad=w_out_pad, act=act)
        dims = ("parallel", "parallel", "arbitrary")
        vmem_need = 2 * th * w_out_pad * cin_p * 2
    else:
        in_specs = [pl.BlockSpec(memory_space=pl.ANY), w_spec, b_spec]
        scratch = (pltpu.VMEM((2, strip_rows, w_in, cin_p), jnp.bfloat16),
                   pltpu.VMEM((k_eff, strip_rows * w_out_pad, cin_p), jnp.bfloat16),
                   pltpu.SemaphoreType.DMA((2,)))
        kern = functools.partial(_convkxk_kernel, k=k_eff, d=d, th=th,
                                 w_out=w_out, w_out_pad=w_out_pad,
                                 strip_rows=strip_rows, act=act)
        # Row axis must stay sequential per batch for the manual strip prefetch;
        # batch is the megacore-parallel axis.
        dims = ("parallel", "arbitrary", "arbitrary")
        vmem_need = (2 * strip_rows * w_in * cin_p * 2
                     + k_eff * strip_rows * w_out_pad * cin_p * 2)

    vmem_need += 2 * k_eff * k_eff * cin_p * tn * 2      # weight buffers
    vmem_need += 2 * tn * 4 + 2 * th * w_out * tn * 2    # bias + output buffers
    vmem_need += th * w_out_pad * tn * 4                 # f32 accumulator
    vmem_limit = max(32 << 20, min(int(vmem_need * 3 // 2) + (8 << 20), 100 << 20))

    cost = pl.CostEstimate(
        flops=2 * B * h_out_pad * w_out_pad * cin_p * cout_p * k_eff * k_eff,
        transcendentals=(B * h_out_pad * w_out * cout_p) if act else 0,
        bytes_accessed=(x_pad.size * 2 + w_pad.size * 2 + bias_pad.size * 4
                        + B * h_out_pad * w_out * cout_p * 2))

    out = pl.pallas_call(
        kern,
        out_shape=jax.ShapeDtypeStruct((B, h_out_pad, w_out, cout_p), jnp.bfloat16),
        grid_spec=pltpu.PrefetchScalarGridSpec(
            num_scalar_prefetch=0,
            grid=grid,
            in_specs=in_specs,
            out_specs=out_spec,
            scratch_shapes=scratch),
        compiler_params=pltpu.CompilerParams(
            dimension_semantics=dims,
            vmem_limit_bytes=vmem_limit),
        cost_estimate=cost,
    )(x_pad, w_pad, bias_pad)

    out = out[:, :h_out, :, :cout]                  # drop row / channel padding
    if out_layout == "NHWC":
        return out                                  # bf16 NHWC, no extra relayout
    return jnp.transpose(out, (0, 3, 1, 2)).astype(x.dtype)   # NHWC -> NCHW


# ----------------------------------------------------------------------------
# Pure-JAX reference mirroring the kernel numerics (bf16 operands / bf16 SiLU
# input, f32 accumulation).
# ----------------------------------------------------------------------------
def _ref_conv_bn_silu(x, weight, gamma, beta, mean, var, *,
                      k=1, s=1, p=None, d=1, eps=1e-5, act=True):
    p = autopad(k, p, d)
    scale = gamma / jnp.sqrt(var + eps)
    bias = beta - mean * scale
    xb = x.astype(jnp.bfloat16).astype(jnp.float32)
    wb = (weight * scale[:, None, None, None]).astype(jnp.bfloat16).astype(jnp.float32)
    y = jax.lax.conv_general_dilated(
        xb, wb, window_strides=(s, s), padding=((p, p), (p, p)),
        rhs_dilation=(d, d), dimension_numbers=("NCHW", "OIHW", "NCHW"))
    y = y + bias[None, :, None, None]
    if act:
        yb = y.astype(jnp.bfloat16).astype(jnp.float32)
        y = yb * jax.nn.sigmoid(yb)
    return y


if __name__ == "__main__":
    key = jax.random.PRNGKey(0)
    keys = jax.random.split(key, 10)

    B, C1, H, W = 2, 4, 16, 16
    C2 = 8
    x = jax.random.normal(keys[0], (B, C1, H, W), jnp.float32)

    gamma = 1.0 + 0.1 * jax.random.normal(keys[1], (C2,), jnp.float32)
    beta = 0.1 * jax.random.normal(keys[2], (C2,), jnp.float32)
    mean = 0.05 * jax.random.normal(keys[3], (C2,), jnp.float32)
    var = jnp.abs(1.0 + 0.1 * jax.random.normal(keys[4], (C2,), jnp.float32))

    def check(out, ref, name):
        ok = jnp.allclose(out, ref, atol=2e-2, rtol=2e-2)
        assert bool(ok), (name, float(jnp.max(jnp.abs(out - ref))))

    # 1) Default Conv config: k=1 (pointwise conv + BN + SiLU).
    w1 = 0.2 * jax.random.normal(keys[5], (C2, C1, 1, 1), jnp.float32)
    out1 = jax.block_until_ready(conv_bn_silu(x, w1, gamma, beta, mean, var, k=1))
    ref1 = _ref_conv_bn_silu(x, w1, gamma, beta, mean, var, k=1)
    assert out1.shape == (B, C2, H, W)
    check(out1, ref1, "k1")

    # 2) 3x3 "same" conv, tiny Cin -> im2col stem path (dense K = k*k*Cin).
    w3 = 0.1 * jax.random.normal(keys[6], (C2, C1, 3, 3), jnp.float32)
    out2 = jax.block_until_ready(conv_bn_silu(x, w3, gamma, beta, mean, var, k=3))
    ref3 = _ref_conv_bn_silu(x, w3, gamma, beta, mean, var, k=3)
    assert out2.shape == (B, C2, H, W)
    check(out2, ref3, "k3_im2col")

    # 3) Same 3x3 conv through the general tap path (manual halo-strip DMA,
    #    two row strips so the prefetch / slot swap is exercised).
    out3 = jax.block_until_ready(
        conv_bn_silu(x, w3, gamma, beta, mean, var, k=3,
                     im2col_max_k=0, row_tile_target=128))
    assert out3.shape == (B, C2, H, W)
    check(out3, ref3, "k3_taps")

    # 4) Wider Cout with forced Cout tiling (n_ct > 1): staged strip reused
    #    across output-channel tiles.
    C3 = 512
    w4 = 0.1 * jax.random.normal(keys[7], (C3, C1, 3, 3), jnp.float32)
    gamma4 = 1.0 + 0.1 * jax.random.normal(keys[8], (C3,), jnp.float32)
    beta4 = 0.1 * jax.random.normal(keys[9], (C3,), jnp.float32)
    mean4 = jnp.zeros((C3,), jnp.float32)
    var4 = jnp.ones((C3,), jnp.float32)
    out4 = jax.block_until_ready(
        conv_bn_silu(x, w4, gamma4, beta4, mean4, var4, k=3,
                     im2col_max_k=0, w_resident_max_bytes=0))
    ref4 = _ref_conv_bn_silu(x, w4, gamma4, beta4, mean4, var4, k=3)
    assert out4.shape == (B, C3, H, W)
    check(out4, ref4, "k3_cout_tiled")

    print("KERNEL_OK")
</pallas_src>

<mosaic_0001>
module attributes {stable_mosaic.version = 11 : i64} {
  func.func @_conv1x1_kernel(%arg0: i32, %arg1: i32, %arg2: i32, %arg3: memref<1x16x16x128xbf16, #tpu.memory_space<vmem>>, %arg4: memref<1x128x128xbf16, #tpu.memory_space<vmem>>, %arg5: memref<1x128xf32, #tpu.memory_space<vmem>>, %arg6: memref<1x16x16x128xbf16, #tpu.memory_space<vmem>>) attributes {dimension_semantics = [#tpu.dimension_semantics<parallel>, #tpu.dimension_semantics<parallel>, #tpu.dimension_semantics<arbitrary>], iteration_bounds = array<i64: 2, 1, 1>, scalar_prefetch = 0 : i64, scratch_operands = 0 : i64, tpu.core_type = #tpu.core_type<tc>, window_params = [{transform_indices = @transform_0, window_bounds = array<i64: 1, 16, 16, 128>}, {transform_indices = @transform_1, window_bounds = array<i64: 1, 128, 128>}, {transform_indices = @transform_2, window_bounds = array<i64: 1, 128>}, {transform_indices = @transform_3, window_bounds = array<i64: 1, 16, 16, 128>}]} {
    %c0 = arith.constant 0 : index
    %c0_0 = arith.constant 0 : index
    %c0_1 = arith.constant 0 : index
    %c0_2 = arith.constant 0 : index
    %0 = vector.load %arg3[%c0, %c0_0, %c0_1, %c0_2] : memref<1x16x16x128xbf16, #tpu.memory_space<vmem>>, vector<1x16x16x128xbf16>
    %1 = vector.shape_cast %0 : vector<1x16x16x128xbf16> to vector<16x16x128xbf16>
    %2 = vector.shape_cast %1 : vector<16x16x128xbf16> to vector<256x128xbf16>
    %c0_3 = arith.constant 0 : index
    %c0_4 = arith.constant 0 : index
    %c0_5 = arith.constant 0 : index
    %3 = vector.load %arg4[%c0_3, %c0_4, %c0_5] : memref<1x128x128xbf16, #tpu.memory_space<vmem>>, vector<1x128x128xbf16>
    %4 = vector.shape_cast %3 : vector<1x128x128xbf16> to vector<128x128xbf16>
    %cst = arith.constant dense<0.000000e+00> : vector<256x128xf32>
    %5 = tpu.matmul %2, %4, %cst {dimension_numbers = #tpu.dot_dimension_numbers<[1], [0], [0], [1], [0, 0, 1, 1], [], []>} : vector<256x128xbf16>, vector<128x128xbf16>, vector<256x128xf32> -> vector<256x128xf32>
    %c0_6 = arith.constant 0 : index
    %c0_7 = arith.constant 0 : index
    %6 = vector.load %arg5[%c0_6, %c0_7] : memref<1x128xf32, #tpu.memory_space<vmem>>, vector<1x128xf32>
    %7 = vector.broadcast %6 : vector<1x128xf32> to vector<256x128xf32>
    %8 = arith.addf %5, %7 : vector<256x128xf32>
    %9 = arith.truncf %8 : vector<256x128xf32> to vector<256x128xbf16>
    %10 = arith.negf %9 : vector<256x128xbf16>
    %11 = math.exp %10 : vector<256x128xbf16>
    %cst_8 = arith.constant 1.000000e+00 : bf16
    %12 = vector.broadcast %cst_8 : bf16 to vector<256x128xbf16>
    %13 = arith.addf %12, %11 : vector<256x128xbf16>
    %14 = arith.divf %12, %13 : vector<256x128xbf16>
    %15 = arith.mulf %9, %14 : vector<256x128xbf16>
    %16 = vector.shape_cast %15 : vector<256x128xbf16> to vector<16x16x128xbf16>
    %c0_9 = arith.constant 0 : index
    %c0_10 = arith.constant 0 : index
    %c0_11 = arith.constant 0 : index
    %c0_12 = arith.constant 0 : index
    %17 = vector.load %arg6[%c0_9, %c0_10, %c0_11, %c0_12] : memref<1x16x16x128xbf16, #tpu.memory_space<vmem>>, vector<1x16x16x128xbf16>
    %18 = vector.shape_cast %17 : vector<1x16x16x128xbf16> to vector<16x16x128xbf16>
    %19 = vector.shape_cast %16 : vector<16x16x128xbf16> to vector<1x16x16x128xbf16>
    tpu.vector_store %arg6[%c0_9, %c0_10, %c0_11, %c0_12], %19 {strides = array<i32>} : memref<1x16x16x128xbf16, #tpu.memory_space<vmem>>, vector<1x16x16x128xbf16>,
    return
  }
  func.func @transform_0(%arg0: i32, %arg1: i32, %arg2: i32) -> (i32, i32, i32, i32) {
    %c0_i32 = arith.constant 0 : i32
    %c0_i32_0 = arith.constant 0 : i32
    %c0_i32_1 = arith.constant 0 : i32
    return %arg0, %arg1, %c0_i32, %c0_i32_0 : i32, i32, i32, i32
  }
  func.func @transform_1(%arg0: i32, %arg1: i32, %arg2: i32) -> (i32, i32, i32) {
    %c0_i32 = arith.constant 0 : i32
    %c0_i32_0 = arith.constant 0 : i32
    %c0_i32_1 = arith.constant 0 : i32
    return %c0_i32, %c0_i32_0, %arg2 : i32, i32, i32
  }
  func.func @transform_2(%arg0: i32, %arg1: i32, %arg2: i32) -> (i32, i32) {
    %c0_i32 = arith.constant 0 : i32
    %c0_i32_0 = arith.constant 0 : i32
    return %c0_i32, %arg2 : i32, i32
  }
  func.func @transform_3(%arg0: i32, %arg1: i32, %arg2: i32) -> (i32, i32, i32, i32) {
    %c0_i32 = arith.constant 0 : i32
    %c0_i32_0 = arith.constant 0 : i32
    return %arg0, %arg1, %c0_i32, %arg2 : i32, i32, i32, i32
  }
}

</mosaic_0001>

<bundles_post_ra>
// kernel: tpu_custom_call.1
= control target key start
LH: loop header
LB: loop body
LE: loop exit
PB: predicated region body
PF: predicated region fallthrough
CT: control target
= control target key end

     0   :  { %8 = vsyncpa [#allocation3], 0  ;;  %s1940_s0 = inlined_call_operand.hbm [shape: bf16[2,16,16,128], index: 0, kind: input, shape index: {}]   ;;  %s1941_s1 = inlined_call_operand.hbm [shape: bf16[1,128,128], index: 1, kind: input, shape index: {}]   ;;  %s1942_s2 = inlined_call_operand.vmem [shape: f32[1,128], index: 2, kind: input, shape index: {}]   ;;  %s1943_s3 = inlined_call_operand.hbm [shape: bf16[2,16,16,128], index: 3, kind: output, shape index: {}]  }
   0x1   :  { %10 = vsyncpa [#allocation3 + $0x1], 0 }
   0x2   :  { %11 = vsyncpa [#allocation6], 0 }
   0x3   :  { %12 = vsyncpa [#allocation4], 0 }
   0x4   :  { %14 = vsyncpa [#allocation4 + $0x1], 0  ;;  %s1557_s12 = smov 0   ;;  %s1559_s13 = smov 0  }
   0x5   :  { %s1561_s14 = smov 0   ;;  %s1563_s15 = smov 0  }
   0x6   :  { %s1565_s16 = smov 0   ;;  %s1567_s17 = smov 0  }
   0x7 LB: > { %s1038_s18 = sadd.s32 4294967295, %s1528_s17   ;;  %s1039_s19 = sadd.s32 4294967294, %s1528_s17   ;;  %s1528_s17 = sphi %s1567_s17, %s20_s17   ;;  %s1524_s16 = sphi %s1565_s16, %s1967_s16   ;;  %s1520_s15 = sphi %s1563_s15, %s1966_s15   ;;  %s1516_s14 = sphi %s1561_s14, %s1965_s14   ;;  %s1512_s13 = sphi %s1559_s13, %s1964_s13   ;;  %s1508_s12 = sphi %s1557_s12, %s1963_s12  }
   0x8   : > { %p61_p0 = scmp.ne.s32.totalorder %s1512_s13, %s1508_s12  ;;  %p1591_p1 = scmp.eq.s32.totalorder %s1038_s18, 0 }
   0x9   : > { %p1595_p2 = scmp.eq.s32.totalorder %s1038_s18, 1  ;;  %p147_p3 = scmp.eq.s32.totalorder %s1039_s19, 1 }
   0xa   : > { %s1948_s20 = scalar_select %p1591_p1, 1, 0 }
   0xb   : > { %s1949_s21 = scalar_select %p1595_p2, 1, 0 }
   0xc   : > { %p1601_p4 = por %p1591_p1, %p61_p0  ;;  %p1040_p5 = scmp.ge.s32.totalorder %s1528_s17, 1 }
   0xd   : > { %p1606_p6 = por %p147_p3, %p61_p0  ;;  %p154_p7 = scmp.lt.s32.totalorder %s1528_s17, 3 }
   0xe   : > { %s1950_s22 = scalar_select %p1601_p4, 1, 0 }
   0xf   : > { %s1951_s23 = scalar_select %p1606_p6, 1, 0 }
  0x10   : > { %p1611_p8 = pnand %p1040_p5, %p154_p7  ;;  %s1530_s25 = smov [#allocation5]  }
  0x11   : > { %s168_s26 = sshll.u32 %s1530_s25, 4  ;;  %s39_s28 = sadd.s32 1, %s1524_s16  ;;  %s169_s26 = int_to_ptr.vmem [resolvable:$true] %s168_s26 }
  0x12   : > { %s1952_s24 = scalar_select %p1611_p8, 1, 0 }
  0x13   : > { %p1227_p9 = pneg %p1611_p8  ;;  %s1384_s4 = scalar_lea.hbm %s1941_s1, 1024 }
  0x14   : > { %p1385_p12 = scmp.ne.s32.totalorder %s1941_s1, %s1384_s4  ;;  %p1391_p5 = scmp.lt.u32.totalorder %s1384_s4, %s1941_s1 }
  0x15   : > { %p1620_p11 = pnand %p1227_p9, %p1591_p1 }
  0x17   : > { %p1386_p13 = pneg %p1620_p11 }
  0x19   : > { %p1387_p0 = pnand %p1386_p13, %p1385_p12 }
  0x1b   : > { %p1388_p3 = pneg %p1387_p0 }
  0x1d   : > { %p1393_p7 = pnand %p1391_p5, %p1388_p3 }
  0x1f   : > { %1396 = shalt.err (!%p1393_p7)
}
  0x20   : > { %s1397_s9 = scalar_lea.vmem %s169_s26, 1024  ;;  %p1405_p1 = scmp.lt.s32.totalorder %s169_s26, %s169_s26 }
  0x21   : > { %p1398_p9 = scmp.ne.s32.totalorder %s169_s26, %s1397_s9  ;;  %p1406_p4 = scmp.lt.s32.totalorder %s1397_s9, %s1397_s9 }
  0x23   : > { %p1400_p10 = pnand %p1398_p9, %p1386_p13  ;;  %p1407_p8 = por %p1406_p4, %p1405_p1 }
  0x25   : > { %p1401_p6 = pneg %p1400_p10 }
  0x27   : > { %p1408_p2 = pnand %p1407_p8, %p1401_p6 }
  0x29   : > { %1411 = shalt.err (!%p1408_p2)
}
  0x2a   : > { %s1531_s10 = smov 64   ;;  %s1532_s11 = smov 4  }
  0x2b   : > { %1230 = dma.hbm_to_vmem [thread:$0]  (!%p1620_p11), %s1941_s1, 1024, %s169_s26, [#allocation6], %s1531_s10, %s1531_s10, %s1532_s11  }
  0x2c   : > { %p41_p1 = scmp.ge.s32.totalorder %s39_s28, 2  ;;  %s48_s25 = sadd.s32 1, %s1516_s14 }
  0x2d   : > { %p55_p2 = scmp.ne.s32.totalorder %s1516_s14, %s1512_s13  ;;  %p56_p4 = scmp.eq.s32.totalorder %s1528_s17, 0 }
  0x2e   : > { %s1969_s28 = smov (%p41_p1, %s39_s28), 0  ;;  %p1955_p8 = scmp.ne.s32.totalorder %s1949_s21, 0 }
  0x2f   : > { %p1650_p6 = por %p56_p4, %p55_p2  ;;  %s43_s30 = ssub.s32 %s1524_s16, %s1969_s28 }
  0x30   : > { %p1656_p10 = por %p1955_p8, %p55_p2  ;;  %p1240_p12 = scmp.lt.s32.totalorder %s1528_s17, 2 }
  0x31   : > { %p46_p11 = scmp.eq.s32.totalorder %s43_s30, 0  ;;  %s188_s26 = sand.u32 1, %s1516_s14  }
  0x32   : > { %s1044_s4 = sshll.u32 %s188_s26, 7  ;;  %s1129_s6 = sshll.u32 %s1524_s16, 11 }
  0x33   : > { %s1665_s5 = scalar_select %p46_p11, %s1516_s14, %s48_s25  }
  0x34   : > { %s1671_s9 = scalar_lea.hbm %s1940_s0, %s1129_s6  ;;  %s192_s21 = scalar_lea.vmem [#allocation2], %s1044_s4 }
  0x35   : > { %s202_s18 = sshll.u32 %s192_s21, 4  ;;  %p1677_p13 = pnand %p1240_p12, %p1650_p6  ;;  %s1673_s18 = int_to_ptr.vmem [resolvable:$true] %s202_s18 }
  0x36   : > { %s1681_s25 = scalar_lea.sflag [#allocation3], %s188_s26  ;;  %s1412_s30 = scalar_lea.hbm %s1671_s9, 2048 }
  0x37   : > { %p1413_p0 = scmp.ne.s32.totalorder %s1671_s9, %s1412_s30  ;;  %p1414_p3 = pneg %p1677_p13 }
  0x38   : > { %s1417_s29 = scalar_lea.hbm %s1940_s0, 4096  ;;  %p1418_p9 = scmp.lt.u32.totalorder %s1671_s9, %s1940_s0 }
  0x39   : > { %p1415_p5 = pnand %p1414_p3, %p1413_p0  ;;  %p1419_p1 = scmp.lt.u32.totalorder %s1417_s29, %s1412_s30 }
  0x3a   : > { %p1421_p4 = scmp.lt.u32.totalorder %s1412_s30, %s1671_s9 }
  0x3b   : > { %p1416_p7 = pneg %p1415_p5  ;;  %p1420_p2 = por %p1419_p1, %p1418_p9 }
  0x3d   : > { %p1422_p6 = por %p1421_p4, %p1420_p2 }
  0x3f   : > { %p1423_p8 = pnand %p1422_p6, %p1416_p7 }
  0x41   : > { %1426 = shalt.err (!%p1423_p8)
}
  0x42   : > { %s1427_s26 = scalar_lea.vmem %s1673_s18, 2048  ;;  %s1533_s21 = smov [#allocation2]  }
  0x43   : > { %p1428_p12 = scmp.ne.s32.totalorder %s1673_s18, %s1427_s26  ;;  %s1432_s4 = sshll.u32 %s1533_s21, 4  ;;  %s1433_s4 = int_to_ptr.vmem [resolvable:$false] %s1432_s4 }
  0x44   : > { %s1434_s6 = scalar_lea.vmem %s1433_s4, 4096  ;;  %p1435_p5 = scmp.lt.s32.totalorder %s1673_s18, %s1433_s4 }
  0x45   : > { %p1430_p11 = pnand %p1428_p12, %p1414_p3  ;;  %p1436_p9 = scmp.lt.s32.totalorder %s1434_s6, %s1427_s26 }
  0x47   : > { %p1431_p0 = pneg %p1430_p11  ;;  %p1437_p1 = por %p1436_p9, %p1435_p5 }
  0x49   : > { %p1438_p2 = pnand %p1437_p1, %p1431_p0 }
  0x4b   : > { %1441 = shalt.err (!%p1438_p2)
}
  0x4c   : > { %1234 = dma.hbm_to_vmem [thread:$0]  (!%p1677_p13), %s1671_s9, 2048, %s1673_s18, %s1681_s25, %s1531_s10, %s1531_s10, %s1532_s11  }
  0x4d   : > { %p1958_p3 = scmp.ne.s32.totalorder %s1952_s24, 0 }
  0x4e   : > { %s1715_s30 = sand.u32 (!%p1958_p3), 1, %s1512_s13   ;;  %p1959_p7 = scmp.ne.s32.totalorder (!%p1958_p3), %s1950_s22, 0 }
  0x4f   : > { %214 = sbr.rel (%p1958_p3) target bundleno = 419 (0x1a3), region = 32  ;;  %s1048_s29 = sshll.u32 (!%p1958_p3), %s1715_s30, 7 }
  0x50   : > { %s217_s7 = scalar_lea.sflag (!%p1958_p3), [#allocation3], %s1715_s30  ;;  %s1721_s19 = scalar_lea.vmem (!%p1958_p3), [#allocation2], %s1048_s29 }
  0x56   : > { %1495 = dma.done.wait (%p1959_p7), %s217_s7, 2048  }
  0x57   : > { %1497 = vsyncadd (%p1959_p7), %s217_s7, 4294965248  ;;  %p1960_p13 = scmp.ne.s32.totalorder %s1948_s20, 0 }
  0x59   : > { %1499 = dma.done.wait (%p1960_p13), [#allocation6], 1024  }
  0x5a   : > { %1501 = vsyncadd (%p1960_p13), [#allocation6], 4294966272  ;;  %v1296_v0 = vld [vmem:[#allocation5] sm:$0xff]   ;;  %v1297_v1 = vld [vmem:[#allocation5 + $0x8] sm:$0xff]   ;;  %s1838_s24 = scalar_lea.vmem [#allocation7], %s1048_s29  ;;  %s1130_s10 = sshll.u32 %s1520_s15, 11 }
  0x5b   : > { %1155 = vmatprep.subr.bf16.mxu0 %v1296_v0  ;;  %1203 = vmatprep.subr.bf16.mxu1 %v1296_v0  ;;  %v1298_v2 = vld [vmem:[#allocation5 + $0x10] sm:$0xff]   ;;  %v1299_v3 = vld [vmem:[#allocation5 + $0x18] sm:$0xff]   ;;  %v1304_v4 = vld [vmem:[%s1721_s19] sm:$0xff]   ;;  %s923_s11 = sshll.u32 %s1838_s24, 4  ;;  %s1883_s18 = scalar_lea.hbm %s1943_s3, %s1130_s10  ;;  %s1885_s11 = int_to_ptr.vmem [resolvable:$true] %s923_s11 }
  0x5c   : > { %1156 = vmatpush3.bf16.msra.mxu0 %v1296_v0  ;;  %1211 = vmatpush3.bf16.msra.mxu1 %v1296_v0  ;;  %v1305_v5 = vld [vmem:[%s1721_s19 + $0x40] sm:$0xff]   ;;  %v1301_v7 = vld [vmem:[#allocation5 + $0x28] sm:$0xff]   ;;  %v1302_v8 = vld [vmem:[#allocation5 + $0x30] sm:$0xff]   ;;  %s906_s25 = scalar_lea.sflag [#allocation4], %s1715_s30  ;;  %s1442_s8 = scalar_lea.vmem %s1885_s11, 2048 }
  0x5d   : > { %1157 = vmatprep.subr.bf16.mxu0 %v1297_v1  ;;  %1204 = vmatprep.subr.bf16.mxu1 %v1297_v1  ;;  %v1300_v6 = vld [vmem:[#allocation5 + $0x20] sm:$0xff]   ;;  %v1303_v9 = vld [vmem:[#allocation5 + $0x38] sm:$0xff]   ;;  %v1306_v10 = vld [vmem:[%s1721_s19 + $0x8] sm:$0xff]   ;;  %p1443_p4 = scmp.ne.s32.totalorder %s1885_s11, %s1442_s8  ;;  %s1534_s26 = smov [#allocation7]  }
  0x5e   : > { %1171 = vmatprep.mubr.bf16.mxu0 %v1304_v4  ;;  %1187 = vmatprep.mubr.bf16.mxu1 %v1305_v5  ;;  %v1307_v11 = vld [vmem:[%s1721_s19 + $0x48] sm:$0xff]   ;;  %v1308_v12 = vld [vmem:[%s1721_s19 + $0x10] sm:$0xff]   ;;  %v1310_v14 = vld [vmem:[%s1721_s19 + $0x18] sm:$0xff]   ;;  %s1446_s21 = sshll.u32 %s1534_s26, 4  ;;  %s1447_s21 = int_to_ptr.vmem [resolvable:$false] %s1446_s21 }
  0x5f   : > { %v1309_v13 = vld [vmem:[%s1721_s19 + $0x50] sm:$0xff]   ;;  %v1311_v15 = vld [vmem:[%s1721_s19 + $0x58] sm:$0xff]   ;;  %v1312_v16 = vld [vmem:[%s1721_s19 + $0x20] sm:$0xff]   ;;  %p1444_p6 = pnand %p1443_p4, %p1656_p10  ;;  %s1448_s4 = scalar_lea.vmem %s1447_s21, 4096 }
  0x60   : > { %1158 = vmatpush3.bf16.msra.mxu0 %v1297_v1  ;;  %1212 = vmatpush3.bf16.msra.mxu1 %v1297_v1  ;;  %v1313_v17 = vld [vmem:[%s1721_s19 + $0x60] sm:$0xff]   ;;  %v1314_v18 = vld [vmem:[%s1721_s19 + $0x28] sm:$0xff]   ;;  %v1316_v20 = vld [vmem:[%s1721_s19 + $0x30] sm:$0xff]   ;;  %p1449_p12 = scmp.lt.s32.totalorder %s1885_s11, %s1447_s21  ;;  %p1450_p11 = scmp.lt.s32.totalorder %s1448_s4, %s1442_s8 }
  0x61   : > { %1159 = vmatprep.subr.bf16.mxu0 %v1298_v2  ;;  %1205 = vmatprep.subr.bf16.mxu1 %v1298_v2  ;;  %v1315_v19 = vld [vmem:[%s1721_s19 + $0x68] sm:$0xff]   ;;  %v1317_v21 = vld [vmem:[%s1721_s19 + $0x70] sm:$0xff]   ;;  %v1318_v22 = vld [vmem:[%s1721_s19 + $0x38] sm:$0xff]   ;;  %p1445_p8 = pneg %p1444_p6 }
  0x62   : > { %v1319_v23 = vld [vmem:[%s1721_s19 + $0x78] sm:$0xff]   ;;  %v1750_v25 = vld [vmem:[%s1942_s2] ss:$0 sm:$0xff]  ;;  %p1451_p0 = por %p1450_p11, %p1449_p12 }
  0x64   : > { %1160 = vmatpush3.bf16.msra.mxu0 %v1298_v2  ;;  %1213 = vmatpush3.bf16.msra.mxu1 %v1298_v2  ;;  %p1452_p5 = pnand %p1451_p0, %p1445_p8 }
  0x65   : > { %1161 = vmatprep.subr.bf16.mxu0 %v1299_v3  ;;  %1206 = vmatprep.subr.bf16.mxu1 %v1299_v3 }
  0x68   : > { %1162 = vmatpush3.bf16.msra.mxu0 %v1299_v3  ;;  %1214 = vmatpush3.bf16.msra.mxu1 %v1299_v3 }
  0x69   : > { %1163 = vmatprep.subr.bf16.mxu0 %v1300_v6  ;;  %1207 = vmatprep.subr.bf16.mxu1 %v1300_v6 }
  0x6c   : > { %1164 = vmatpush3.bf16.msra.mxu0 %v1300_v6  ;;  %1215 = vmatpush3.bf16.msra.mxu1 %v1300_v6 }
  0x6d   : > { %1165 = vmatprep.subr.bf16.mxu0 %v1301_v7  ;;  %1208 = vmatprep.subr.bf16.mxu1 %v1301_v7 }
  0x70   : > { %1166 = vmatpush3.bf16.msra.mxu0 %v1301_v7  ;;  %1216 = vmatpush3.bf16.msra.mxu1 %v1301_v7 }
  0x71   : > { %1167 = vmatprep.subr.bf16.mxu0 %v1302_v8  ;;  %1209 = vmatprep.subr.bf16.mxu1 %v1302_v8 }
  0x74   : > { %1168 = vmatpush3.bf16.msra.mxu0 %v1302_v8  ;;  %1217 = vmatpush3.bf16.msra.mxu1 %v1302_v8 }
  0x75   : > { %1169 = vmatprep.subr.bf16.mxu0 %v1303_v9  ;;  %1210 = vmatprep.subr.bf16.mxu1 %v1303_v9 }
  0x78   : > { %1170 = vmatpush3.bf16.msra.mxu0 %v1303_v9  ;;  %1218 = vmatpush3.bf16.msra.mxu1 %v1303_v9 }
  0x7b   : > { %1172 = vmatmul.mubr.bf16.vlgmr.msra.gmra.mrb[0].mxu0 %v1306_v10  ;;  %1188 = vmatmul.mubr.bf16.vlgmr.msra.gmra.mrb[0].mxu1 %v1307_v11 }
  0x7c   : > { %1175 = vmatprep.mubr.bf16.mxu0 %v1308_v12  ;;  %1191 = vmatprep.mubr.bf16.mxu1 %v1309_v13 }
  0x83   : > { %1176 = vmatmul.mubr.bf16.gmra.mrb[4].mxu0 %v1310_v14  ;;  %1192 = vmatmul.mubr.bf16.gmra.mrb[4].mxu1 %v1311_v15 }
  0x84   : > { %1179 = vmatprep.mubr.bf16.mxu0 %v1312_v16  ;;  %1195 = vmatprep.mubr.bf16.mxu1 %v1313_v17 }
  0x8b   : > { %1180 = vmatmul.mubr.bf16.gmra.mrb[8].mxu0 %v1314_v18  ;;  %1196 = vmatmul.mubr.bf16.gmra.mrb[8].mxu1 %v1315_v19 }
  0x8c   : > { %1183 = vmatprep.mubr.bf16.mxu0 %v1316_v20  ;;  %1199 = vmatprep.mubr.bf16.mxu1 %v1317_v21 }
  0x93   : > { %1184 = vmatmul.mubr.bf16.gmra.mrb[12].mxu0 %v1318_v22  ;;  %1200 = vmatmul.mubr.bf16.gmra.mrb[12].mxu1 %v1319_v23 }
 0x14e   : > { %v1173_v24 = vpop.f32.mrb[0].mxu0  ;;  %v1189_v26 = vpop.f32.mrb[0].mxu1 }
 0x14f   : > { %v490_v27 = vpop.f32.mrb[1].mxu0  ;;  %v554_v28 = vpop.f32.mrb[1].mxu1  ;;  %v499_v31 = vadd.f32 %v1173_v24, %v1750_v25  ;;  %v563_v32 = vadd.f32 %v1189_v26, %v1750_v25 }
 0x150   : > { %v1174_v29 = vpop.f32.mrb[2].mxu0  ;;  %v1190_v30 = vpop.f32.mrb[2].mxu1  ;;  %v491_v37 = vadd.f32 %v1750_v25, %v490_v27  ;;  %v555_v38 = vadd.f32 %v1750_v25, %v554_v28 }
 0x151   : > { %v502_v33 = vadd.f32 %v1174_v29, %v1750_v25  ;;  %v566_v34 = vadd.f32 %v1190_v30, %v1750_v25  ;;  %v493_v35 = vpop.f32.mrb[3].mxu0  ;;  %v557_v36 = vpop.f32.mrb[3].mxu1 }
 0x152   : > { %v494_v39 = vadd.f32 %v1750_v25, %v493_v35  ;;  %v558_v40 = vadd.f32 %v1750_v25, %v557_v36 }
 0x153   : > { %v1760_v41 = vpack.c.bf16 %v502_v33, %v499_v31  ;;  %v1762_v42 = vpack.c.bf16 %v566_v34, %v563_v32 }
 0x154   : > { %v1764_v43 = vpack.c.bf16 %v494_v39, %v491_v37  ;;  %v1766_v44 = vpack.c.bf16 %v558_v40, %v555_v38 }
 0x155   : > { %v1077_v45 = vmul.bf16 3216621497, %v1760_v41  ;;  %v1085_v46 = vmul.bf16 3216621497, %v1762_v42 }
 0x156   : > { %v1076_v47 = vmul.bf16 3216621497, %v1764_v43  ;;  %v1084_v48 = vmul.bf16 3216621497, %v1766_v44  ;;  %v1177_v49 = vpop.f32.mrb[4].mxu0  ;;  %v1193_v50 = vpop.f32.mrb[4].mxu1 }
 0x157   : > { %1320 = vpow.bf16 %v1077_v45  ;;  %v506_v51 = vpop.f32.mrb[5].mxu0  ;;  %v570_v52 = vpop.f32.mrb[5].mxu1  ;;  %v515_v53 = vadd.f32 %v1177_v49, %v1750_v25  ;;  %v579_v54 = vadd.f32 %v1193_v50, %v1750_v25 }
 0x158   : > { %1322 = vpow.bf16 %v1085_v46  ;;  %v1178_v55 = vpop.f32.mrb[6].mxu0  ;;  %v1194_v56 = vpop.f32.mrb[6].mxu1  ;;  %v507_v57 = vadd.f32 %v1750_v25, %v506_v51  ;;  %v571_v62 = vadd.f32 %v1750_v25, %v570_v52 }
 0x159   : > { %1324 = vpow.bf16 %v1076_v47  ;;  %v518_v58 = vadd.f32 %v1178_v55, %v1750_v25  ;;  %v582_v59 = vadd.f32 %v1194_v56, %v1750_v25  ;;  %v509_v60 = vpop.f32.mrb[7].mxu0  ;;  %v573_v61 = vpop.f32.mrb[7].mxu1 }
 0x15a   : > { %1326 = vpow.bf16 %v1084_v48  ;;  %v510_v63 = vadd.f32 %v1750_v25, %v509_v60  ;;  %v574_v0 = vadd.f32 %v1750_v25, %v573_v61 }
 0x15b   : > { %v1780_v1 = vpack.c.bf16 %v518_v58, %v515_v53  ;;  %v1782_v2 = vpack.c.bf16 %v582_v59, %v579_v54 }
 0x15c   : > { %v1784_v3 = vpack.c.bf16 %v510_v63, %v507_v57  ;;  %v1786_v4 = vpack.c.bf16 %v574_v0, %v571_v62 }
 0x15d   : > { %v1079_v5 = vmul.bf16 3216621497, %v1780_v1  ;;  %v1087_v6 = vmul.bf16 3216621497, %v1782_v2 }
 0x15e   : > { %v1078_v7 = vmul.bf16 3216621497, %v1784_v3  ;;  %v1086_v8 = vmul.bf16 3216621497, %v1786_v4  ;;  %v1181_v9 = vpop.f32.mrb[8].mxu0  ;;  %v1197_v10 = vpop.f32.mrb[8].mxu1 }
 0x15f   : > { %1328 = vpow.bf16 %v1079_v5  ;;  %v522_v11 = vpop.f32.mrb[9].mxu0  ;;  %v586_v12 = vpop.f32.mrb[9].mxu1  ;;  %v531_v13 = vadd.f32 %v1181_v9, %v1750_v25  ;;  %v595_v14 = vadd.f32 %v1197_v10, %v1750_v25 }
 0x160   : > { %1330 = vpow.bf16 %v1087_v6  ;;  %v1182_v15 = vpop.f32.mrb[10].mxu0  ;;  %v1198_v16 = vpop.f32.mrb[10].mxu1  ;;  %v523_v17 = vadd.f32 %v1750_v25, %v522_v11  ;;  %v587_v23 = vadd.f32 %v1750_v25, %v586_v12 }
 0x161   : > { %1332 = vpow.bf16 %v1078_v7  ;;  %v534_v18 = vadd.f32 %v1182_v15, %v1750_v25  ;;  %v598_v19 = vadd.f32 %v1198_v16, %v1750_v25  ;;  %v525_v20 = vpop.f32.mrb[11].mxu0  ;;  %v589_v21 = vpop.f32.mrb[11].mxu1 }
 0x162   : > { %v1321_v22 = vpop.eup %1320  ;;  %1334 = vpow.bf16 %v1086_v8  ;;  %v526_v24 = vadd.f32 %v1750_v25, %v525_v20  ;;  %v590_v26 = vadd.f32 %v1750_v25, %v589_v21 }
 0x163   : > { %v1323_v27 = vpop.eup %1322  ;;  %v698_v28 = vadd.bf16 1065369472, %v1321_v22  ;;  %v1800_v29 = vpack.c.bf16 %v534_v18, %v531_v13  ;;  %v1802_v30 = vpack.c.bf16 %v598_v19, %v595_v14 }
 0x164   : > { %v1325_v31 = vpop.eup %1324  ;;  %v706_v32 = vadd.bf16 1065369472, %v1323_v27  ;;  %v1804_v33 = vpack.c.bf16 %v526_v24, %v523_v17  ;;  %v1806_v34 = vpack.c.bf16 %v590_v26, %v587_v23 }
 0x165   : > { %v1327_v35 = vpop.eup %1326  ;;  %1336 = vrcp.bf16 %v698_v28  ;;  %v697_v36 = vadd.bf16 1065369472, %v1325_v31  ;;  %v1081_v37 = vmul.bf16 3216621497, %v1800_v29  ;;  %v1089_v39 = vmul.bf16 3216621497, %v1802_v30 }
 0x166   : > { %1338 = vrcp.bf16 %v706_v32  ;;  %v705_v38 = vadd.bf16 1065369472, %v1327_v35  ;;  %v1080_v40 = vmul.bf16 3216621497, %v1804_v33  ;;  %v1185_v45 = vpop.f32.mrb[12].mxu0  ;;  %v1201_v46 = vpop.f32.mrb[12].mxu1 }
 0x167   : > { %1340 = vrcp.bf16 %v697_v36  ;;  %v1088_v47 = vmul.bf16 3216621497, %v1806_v34  ;;  %v538_v48 = vpop.f32.mrb[13].mxu0  ;;  %v602_v49 = vpop.f32.mrb[13].mxu1  ;;  %v547_v50 = vadd.f32 %v1185_v45, %v1750_v25  ;;  %v611_v51 = vadd.f32 %v1201_v46, %v1750_v25 }
 0x168   : > { %1342 = vrcp.bf16 %v705_v38  ;;  %v539_v52 = vadd.f32 %v1750_v25, %v538_v48  ;;  %v1186_v53 = vpop.f32.mrb[14].mxu0  ;;  %v1202_v54 = vpop.f32.mrb[14].mxu1  ;;  %v603_v56 = vadd.f32 %v1750_v25, %v602_v49 }
 0x169   : > { %1344 = vpow.bf16 %v1081_v37  ;;  %v550_v57 = vadd.f32 %v1186_v53, %v1750_v25  ;;  %v614_v58 = vadd.f32 %v1202_v54, %v1750_v25  ;;  %v541_v59 = vpop.f32.mrb[15].mxu0  ;;  %v605_v60 = vpop.f32.mrb[15].mxu1 }
 0x16a   : > { %v1329_v55 = vpop.eup %1328  ;;  %1346 = vpow.bf16 %v1089_v39  ;;  %v542_v63 = vadd.f32 %v1750_v25, %v541_v59  ;;  %v606_v0 = vadd.f32 %v1750_v25, %v605_v60 }
 0x16b   : > { %v1331_v61 = vpop.eup %1330  ;;  %v700_v62 = vadd.bf16 1065369472, %v1329_v55  ;;  %1348 = vpow.bf16 %v1080_v40  ;;  %v1820_v7 = vpack.c.bf16 %v550_v57, %v547_v50  ;;  %v1822_v8 = vpack.c.bf16 %v614_v58, %v611_v51 }
 0x16c   : > { %v1333_v5 = vpop.eup %1332  ;;  %v708_v6 = vadd.bf16 1065369472, %v1331_v61  ;;  %1350 = vpow.bf16 %v1088_v47  ;;  %v1824_v11 = vpack.c.bf16 %v542_v63, %v539_v52  ;;  %v1826_v12 = vpack.c.bf16 %v606_v0, %v603_v56 }
 0x16d   : > { %v1335_v9 = vpop.eup %1334  ;;  %1352 = vrcp.bf16 %v700_v62  ;;  %v699_v10 = vadd.bf16 1065369472, %v1333_v5  ;;  %v1083_v14 = vmul.bf16 3216621497, %v1820_v7  ;;  %v1091_v25 = vmul.bf16 3216621497, %v1822_v8 }
 0x16e   : > { %1354 = vrcp.bf16 %v708_v6  ;;  %v707_v13 = vadd.bf16 1065369472, %v1335_v9  ;;  %v1082_v15 = vmul.bf16 3216621497, %v1824_v11  ;;  %v1090_v17 = vmul.bf16 3216621497, %v1826_v12 }
 0x16f   : > { %1356 = vrcp.bf16 %v699_v10 }
 0x170   : > { %v1337_v16 = vpop.eup %1336  ;;  %1358 = vrcp.bf16 %v707_v13 }
 0x171   : > { %v1339_v18 = vpop.eup %1338  ;;  %v716_v19 = vmul.bf16 1065369472, %v1337_v16  ;;  %1360 = vpow.bf16 %v1083_v14 }
 0x172   : > { %v1341_v20 = vpop.eup %1340  ;;  %v732_v21 = vmul.bf16 1065369472, %v1339_v18  ;;  %1362 = vpow.bf16 %v1091_v25 }
 0x173   : > { %v1343_v22 = vpop.eup %1342  ;;  %v746_v23 = vmul.bf16 %v716_v19, %v1760_v41  ;;  %v714_v24 = vmul.bf16 1065369472, %v1341_v20  ;;  %1364 = vpow.bf16 %v1082_v15 }
 0x174   : > { %v1345_v26 = vpop.eup %1344  ;;  %v754_v27 = vmul.bf16 %v732_v21, %v1762_v42  ;;  %v730_v28 = vmul.bf16 1065369472, %v1343_v22  ;;  %1366 = vpow.bf16 %v1090_v17 }
 0x175   : > { %v1347_v31 = vpop.eup %1346  ;;  %v1094_v32 = vcombine.low %v746_v23, %v746_v23  ;;  %v1095_v35 = vcombine.high %v746_v23, %v746_v23  ;;  %v745_v36 = vmul.bf16 %v714_v24, %v1764_v43  ;;  %v702_v37 = vadd.bf16 1065369472, %v1345_v26 }
 0x176   : > { %v1349_v38 = vpop.eup %1348  ;;  %v1110_v39 = vcombine.low %v754_v27, %v754_v27  ;;  %v1111_v40 = vcombine.high %v754_v27, %v754_v27  ;;  %v753_v45 = vmul.bf16 %v730_v28, %v1766_v44  ;;  %v710_v41 = vadd.bf16 1065369472, %v1347_v31 }
 0x177   : > { %v1351_v46 = vpop.eup %1350  ;;  %875 = vst [vmem:[%s1838_s24 + $0x8] sm:$0xf] %v1094_v32  ;;  %876 = vst [vmem:[%s1838_s24 + $0xc] sm:$0xf] %v1095_v35  ;;  %v1092_v42 = vcombine.low %v745_v36, %v745_v36  ;;  %v1093_v43 = vcombine.high %v745_v36, %v745_v36  ;;  %1368 = vrcp.bf16 %v702_v37  ;;  %v701_v47 = vadd.bf16 1065369472, %v1349_v38 }
 0x178   : > { %v1353_v44 = vpop.eup %1352  ;;  %891 = vst [vmem:[%s1838_s24 + $0x48] sm:$0xf] %v1110_v39  ;;  %892 = vst [vmem:[%s1838_s24 + $0x4c] sm:$0xf] %v1111_v40  ;;  %v1108_v48 = vcombine.low %v753_v45, %v753_v45  ;;  %v1109_v49 = vcombine.high %v753_v45, %v753_v45  ;;  %1370 = vrcp.bf16 %v710_v41  ;;  %v709_v50 = vadd.bf16 1065369472, %v1351_v46 }
 0x179   : > { %v1355_v51 = vpop.eup %1354  ;;  %873 = vst [vmem:[%s1838_s24] sm:$0xf] %v1092_v42  ;;  %874 = vst [vmem:[%s1838_s24 + $0x4] sm:$0xf] %v1093_v43  ;;  %v720_v52 = vmul.bf16 1065369472, %v1353_v44  ;;  %1372 = vrcp.bf16 %v701_v47 }
 0x17a   : > { %v1357_v53 = vpop.eup %1356  ;;  %889 = vst [vmem:[%s1838_s24 + $0x40] sm:$0xf] %v1108_v48  ;;  %890 = vst [vmem:[%s1838_s24 + $0x44] sm:$0xf] %v1109_v49  ;;  %v736_v54 = vmul.bf16 1065369472, %v1355_v51  ;;  %1374 = vrcp.bf16 %v709_v50 }
 0x17b   : > { %v1359_v55 = vpop.eup %1358  ;;  %v748_v56 = vmul.bf16 %v720_v52, %v1780_v1  ;;  %v718_v57 = vmul.bf16 1065369472, %v1357_v53 }
 0x17c   : > { %v1361_v58 = vpop.eup %1360  ;;  %v756_v59 = vmul.bf16 %v736_v54, %v1782_v2  ;;  %v734_v60 = vmul.bf16 1065369472, %v1359_v55 }
 0x17d   : > { %v1363_v61 = vpop.eup %1362  ;;  %v1098_v62 = vcombine.low %v748_v56, %v748_v56  ;;  %v1099_v63 = vcombine.high %v748_v56, %v748_v56  ;;  %v747_v0 = vmul.bf16 %v718_v57, %v1784_v3  ;;  %v704_v5 = vadd.bf16 1065369472, %v1361_v58 }
 0x17e   : > { %v1365_v6 = vpop.eup %1364  ;;  %v1114_v9 = vcombine.low %v756_v59, %v756_v59  ;;  %v1115_v10 = vcombine.high %v756_v59, %v756_v59  ;;  %v755_v1 = vmul.bf16 %v734_v60, %v1786_v4  ;;  %v712_v13 = vadd.bf16 1065369472, %v1363_v61 }
 0x17f   : > { %v1367_v14 = vpop.eup %1366  ;;  %879 = vst [vmem:[%s1838_s24 + $0x18] sm:$0xf] %v1098_v62  ;;  %880 = vst [vmem:[%s1838_s24 + $0x1c] sm:$0xf] %v1099_v63  ;;  %v1096_v2 = vcombine.low %v747_v0, %v747_v0  ;;  %v1097_v25 = vcombine.high %v747_v0, %v747_v0  ;;  %1376 = vrcp.bf16 %v704_v5  ;;  %v703_v15 = vadd.bf16 1065369472, %v1365_v6 }
 0x180   : > { %895 = vst [vmem:[%s1838_s24 + $0x58] sm:$0xf] %v1114_v9  ;;  %896 = vst [vmem:[%s1838_s24 + $0x5c] sm:$0xf] %v1115_v10  ;;  %v1112_v3 = vcombine.low %v755_v1, %v755_v1  ;;  %v1113_v16 = vcombine.high %v755_v1, %v755_v1  ;;  %1378 = vrcp.bf16 %v712_v13  ;;  %v711_v17 = vadd.bf16 1065369472, %v1367_v14 }
 0x181   : > { %877 = vst [vmem:[%s1838_s24 + $0x10] sm:$0xf] %v1096_v2  ;;  %878 = vst [vmem:[%s1838_s24 + $0x14] sm:$0xf] %v1097_v25  ;;  %1380 = vrcp.bf16 %v703_v15 }
 0x182   : > { %v1369_v4 = vpop.eup %1368  ;;  %893 = vst [vmem:[%s1838_s24 + $0x50] sm:$0xf] %v1112_v3  ;;  %894 = vst [vmem:[%s1838_s24 + $0x54] sm:$0xf] %v1113_v16  ;;  %1382 = vrcp.bf16 %v711_v17 }
 0x183   : > { %v1371_v18 = vpop.eup %1370  ;;  %v724_v19 = vmul.bf16 1065369472, %v1369_v4 }
 0x184   : > { %v1373_v20 = vpop.eup %1372  ;;  %v740_v21 = vmul.bf16 1065369472, %v1371_v18 }
 0x185   : > { %v1375_v22 = vpop.eup %1374  ;;  %v750_v23 = vmul.bf16 %v724_v19, %v1800_v29  ;;  %v722_v24 = vmul.bf16 1065369472, %v1373_v20 }
 0x186   : > { %v758_v26 = vmul.bf16 %v740_v21, %v1802_v30  ;;  %v738_v27 = vmul.bf16 1065369472, %v1375_v22 }
 0x187   : > { %v1102_v28 = vcombine.low %v750_v23, %v750_v23  ;;  %v1103_v31 = vcombine.high %v750_v23, %v750_v23  ;;  %v749_v32 = vmul.bf16 %v722_v24, %v1804_v33 }
 0x188   : > { %v1118_v35 = vcombine.low %v758_v26, %v758_v26  ;;  %v1119_v36 = vcombine.high %v758_v26, %v758_v26  ;;  %v757_v37 = vmul.bf16 %v738_v27, %v1806_v34 }
 0x189   : > { %883 = vst [vmem:[%s1838_s24 + $0x28] sm:$0xf] %v1102_v28  ;;  %884 = vst [vmem:[%s1838_s24 + $0x2c] sm:$0xf] %v1103_v31  ;;  %v1100_v29 = vcombine.low %v749_v32, %v749_v32  ;;  %v1101_v38 = vcombine.high %v749_v32, %v749_v32 }
 0x18a   : > { %v1377_v39 = vpop.eup %1376  ;;  %899 = vst [vmem:[%s1838_s24 + $0x68] sm:$0xf] %v1118_v35  ;;  %900 = vst [vmem:[%s1838_s24 + $0x6c] sm:$0xf] %v1119_v36  ;;  %v1116_v30 = vcombine.low %v757_v37, %v757_v37  ;;  %v1117_v40 = vcombine.high %v757_v37, %v757_v37 }
 0x18b   : > { %v1379_v45 = vpop.eup %1378  ;;  %881 = vst [vmem:[%s1838_s24 + $0x20] sm:$0xf] %v1100_v29  ;;  %882 = vst [vmem:[%s1838_s24 + $0x24] sm:$0xf] %v1101_v38  ;;  %v728_v33 = vmul.bf16 1065369472, %v1377_v39 }
 0x18c   : > { %v1381_v41 = vpop.eup %1380  ;;  %897 = vst [vmem:[%s1838_s24 + $0x60] sm:$0xf] %v1116_v30  ;;  %898 = vst [vmem:[%s1838_s24 + $0x64] sm:$0xf] %v1117_v40  ;;  %v744_v34 = vmul.bf16 1065369472, %v1379_v45 }
 0x18d   : > { %v1383_v46 = vpop.eup %1382  ;;  %v752_v42 = vmul.bf16 %v728_v33, %v1820_v7  ;;  %v726_v43 = vmul.bf16 1065369472, %v1381_v41 }
 0x18e   : > { %v760_v47 = vmul.bf16 %v744_v34, %v1822_v8  ;;  %v742_v44 = vmul.bf16 1065369472, %v1383_v46 }
 0x18f   : > { %v1106_v48 = vcombine.low %v752_v42, %v752_v42  ;;  %v1107_v49 = vcombine.high %v752_v42, %v752_v42  ;;  %v751_v50 = vmul.bf16 %v726_v43, %v1824_v11 }
 0x190   : > { %v1122_v51 = vcombine.low %v760_v47, %v760_v47  ;;  %v1123_v52 = vcombine.high %v760_v47, %v760_v47  ;;  %v759_v7 = vmul.bf16 %v742_v44, %v1826_v12 }
 0x191   : > { %887 = vst [vmem:[%s1838_s24 + $0x38] sm:$0xf] %v1106_v48  ;;  %888 = vst [vmem:[%s1838_s24 + $0x3c] sm:$0xf] %v1107_v49  ;;  %v1104_v8 = vcombine.low %v751_v50, %v751_v50  ;;  %v1105_v53 = vcombine.high %v751_v50, %v751_v50 }
 0x192   : > { %903 = vst [vmem:[%s1838_s24 + $0x78] sm:$0xf] %v1122_v51  ;;  %904 = vst [vmem:[%s1838_s24 + $0x7c] sm:$0xf] %v1123_v52  ;;  %v1120_v11 = vcombine.low %v759_v7, %v759_v7  ;;  %v1121_v54 = vcombine.high %v759_v7, %v759_v7 }
 0x193   : > { %885 = vst [vmem:[%s1838_s24 + $0x30] sm:$0xf] %v1104_v8  ;;  %886 = vst [vmem:[%s1838_s24 + $0x34] sm:$0xf] %v1105_v53 }
 0x194   : > { %901 = vst [vmem:[%s1838_s24 + $0x70] sm:$0xf] %v1120_v11  ;;  %902 = vst [vmem:[%s1838_s24 + $0x74] sm:$0xf] %v1121_v54 }
 0x195   : > { %1455 = shalt.err (!%p1452_p5)
}
 0x196   : > { %s1456_s6 = scalar_lea.hbm %s1883_s18, 2048  ;;  %s1460_s19 = scalar_lea.hbm %s1943_s3, 4096 }
 0x197   : > { %p1457_p9 = scmp.ne.s32.totalorder %s1883_s18, %s1456_s6  ;;  %p1461_p3 = scmp.lt.u32.totalorder %s1883_s18, %s1943_s3 }
 0x198   : > { %p1462_p7 = scmp.lt.u32.totalorder %s1460_s19, %s1456_s6  ;;  %p1464_p4 = scmp.lt.u32.totalorder %s1456_s6, %s1883_s18 }
 0x199   : > { %p1458_p1 = pnand %p1457_p9, %p1656_p10 }
 0x19a   : > { %p1463_p13 = por %p1462_p7, %p1461_p3 }
 0x19b   : > { %p1459_p2 = pneg %p1458_p1 }
 0x19c   : > { %p1465_p6 = por %p1464_p4, %p1463_p13 }
 0x19e   : > { %p1466_p8 = pnand %p1465_p6, %p1459_p2 }
 0x1a0   : > { %1469 = shalt.err (!%p1466_p8)
}
 0x1a1   : > { %s1535_s24 = smov 64   ;;  %s1536_s10 = smov 4  }
 0x1a2   : > { %1225 = dma.vmem_to_hbm [thread:$0]  (%p1656_p10), %s1885_s11, 2048, %s1883_s18, %s906_s25, %s1535_s24, %s1535_s24, %s1536_s10  }
 0x1a3 PF: > { %s938_s15 = sand.u32 1, %s1508_s12   ;;  %p1961_p12 = scmp.ne.s32.totalorder %s1951_s23, 0 }
 0x1a4   : > { %p1962_p11 = scmp.ge.s32.totalorder %s1528_s17, 2  ;;  %s939_s9 = scalar_lea.sflag [#allocation4], %s938_s15 }
 0x1a6   : > { %p1236_p0 = pnand %p1962_p11, %p1961_p12 }
 0x1a8   : > { %1503 = dma.done.wait (!%p1236_p0), %s939_s9, 2048  }
 0x1a9   : > { %1505 = vsyncadd (!%p1236_p0), %s939_s9, 4294965248  ;;  %s20_s17 = sadd.s32 1, %s1528_s17   ;;  %s1963_s12 = smov %s1512_s13 }
 0x1aa   : > { %p17_p5 = scmp.ge.s32.totalorder %s20_s17, 4   ;;  %s1964_s13 = smov %s1516_s14 }
 0x1ab   : > { %s1965_s14 = smov %s1665_s5  ;;  %s1966_s15 = smov %s1524_s16 }
 0x1ac   : > { %s1967_s16 = smov %s1969_s28  ;;  %19 = sbr.rel (!%p17_p5) target bundleno = 7 (0x7), region = 85 }
 0x1b3   :  { %944 = vsyncpa [#allocation3], 1 }
 0x1b4   :  { %946 = vsyncpa [#allocation3 + $0x1], 1 }
 0x1b5   :  { %947 = vsyncpa [#allocation6], 1 }
 0x1b6   :  { %948 = vsyncpa [#allocation4], 1 }
 0x1b7   :  { %950 = vsyncpa [#allocation4 + $0x1], 1 }

</bundles_post_ra>
